<compile_context>
chip_gen: v6e
topology: v6e:2x2x1
jax: 0.10.0
libtpu: 0.0.40
codegen_flags: <defaults>
</compile_context>

<pallas_src>
import functools
import math

import numpy as np
import jax
import jax.numpy as jnp
from jax.experimental import pallas as pl
from jax.experimental.pallas import tpu as pltpu  # noqa: F401  (TPU backend)

BN_EPS = 1e-5


# ----------------------------------------------------------------------------
# Fused kernel: spectral attention + band attention + Wo proj + BN + FFN + BN.
# Operands (all whole-array VMEM blocks, no grid):
#   x_ref    : (B*N, E)   f32  flattened activations
#   w_ref    : (7, E, E)  bf16 [Wq2c, Wk2c/sqrt(d), Wv2c, Wo2,
#                               Wqc, Wkc*(1-cw)/sqrt(d), Wo1*(1-hw)]
#   corr_ref : (N, N)     f32  cw * (corr_map @ Cv) / sqrt(N)
#   g_ref    : (E, H)     f32  head-group indicator
#   gt_ref   : (H, E)     f32  its transpose
#   w1t_ref  : (E, F)     bf16 W1^T
#   w2t_ref  : (F, E)     bf16 diag(bn2_scale) @ W2^T
#   vec_ref  : (6, E)     f32  [bn1_scale, bn1_shift, b2_folded,
#                               bn3_scale, bn3_shift, hw]
#   b1_ref   : (1, F)     f32
# ----------------------------------------------------------------------------
def _fused_spectra_kernel(x_ref, w_ref, corr_ref, g_ref, gt_ref, w1t_ref,
                          w2t_ref, vec_ref, b1_ref, out_ref, *, nhead):
    rows, E = x_ref.shape
    N = corr_ref.shape[0]
    B = rows // N
    H = nhead
    d = E // H

    x = x_ref[...]                                       # (B*N, E) f32
    x_bf = x.astype(jnp.bfloat16)

    # ---- spectral ("cross-sample") attention: softmax over the batch axis ----
    # Batched over ALL (sample i, band n, head h) rows at once; exp and
    # reciprocal each run exactly once.
    q2 = jnp.dot(x_bf, w_ref[0], preferred_element_type=jnp.float32)   # (B*N, E)
    k2 = jnp.dot(x_bf, w_ref[1], preferred_element_type=jnp.float32)   # 1/sqrt(d) folded
    v2 = jnp.dot(x_bf, w_ref[2], preferred_element_type=jnp.float32)

    G = g_ref[...]                                       # (E, H)
    GT = gt_ref[...]                                     # (H, E)

    # sample-j blocks tiled across every query sample i (clean sublane tiling)
    k2rep = [jnp.concatenate([k2[j * N:(j + 1) * N, :]] * B, axis=0) for j in range(B)]
    v2rep = [jnp.concatenate([v2[j * N:(j + 1) * N, :]] * B, axis=0) for j in range(B)]

    # D_j[i*N+n, h] = <q2(i,n,h,:), k2(j,n,h,:)>   (one MXU dot per key sample)
    D = [jnp.dot(q2 * k2rep[j], G, preferred_element_type=jnp.float32)
         for j in range(B)]                              # B x (B*N, H)
    m = D[0]
    for j in range(1, B):
        m = jnp.maximum(m, D[j])                         # elementwise (no XLU reduce)
    ecat = jnp.exp(jnp.concatenate([D[j] - m for j in range(B)], axis=1))   # ONE exp
    den = ecat[:, 0:H]
    for j in range(1, B):
        den = den + ecat[:, j * H:(j + 1) * H]
    inv = pl.reciprocal(den, approx=True)                # ONE reciprocal (EUP)
    p2 = jnp.dot(ecat[:, 0:H] * inv, GT,
                 preferred_element_type=jnp.float32) * v2rep[0]
    for j in range(1, B):
        p2 = p2 + jnp.dot(ecat[:, j * H:(j + 1) * H] * inv, GT,
                          preferred_element_type=jnp.float32) * v2rep[j]
    heads2 = jnp.dot(p2.astype(jnp.bfloat16), w_ref[3],
                     preferred_element_type=jnp.float32)                 # @ Wo2

    # ---- band attention (+ precomputed correlation bias), fully batched ----
    x2 = x + heads2                                      # same input for every head
    x2_bf = x2.astype(jnp.bfloat16)
    q = jnp.dot(x2_bf, w_ref[4], preferred_element_type=jnp.float32)     # Wq (also V)
    k = jnp.dot(x2_bf, w_ref[5], preferred_element_type=jnp.float32)     # (1-cw)/sqrt(d) folded

    # Head split into a (H*B, N, d) batch: H lane slices + layout-clean
    # (B*N, d) -> (B, N, d) sublane reshapes; z = h*B + b.
    qz = jnp.concatenate(
        [q[:, h * d:(h + 1) * d].reshape(B, N, d) for h in range(H)], axis=0)
    kz = jnp.concatenate(
        [k[:, h * d:(h + 1) * d].reshape(B, N, d) for h in range(H)], axis=0)

    s = jnp.einsum('znd,zmd->znm', qz, kz,
                   preferred_element_type=jnp.float32)   # (H*B, N, N), ONE batched dot
    s = s + corr_ref[...]                                # cw*(corr@Cv)/sqrt(N), bcast over z
    s = s - jnp.max(s, axis=-1, keepdims=True)           # ONE row-max pass
    e = jnp.exp(s)                                       # ONE exp
    a = e * pl.reciprocal(jnp.sum(e, axis=-1, keepdims=True), approx=True)
    pz = jnp.einsum('znm,zmd->znd', a, qz,
                    preferred_element_type=jnp.float32)  # V == Q-proj, ONE batched dot
    p1 = jnp.concatenate(
        [pz[h * B:(h + 1) * B].reshape(B * N, d) for h in range(H)], axis=1)  # (B*N, E)
    heads1 = jnp.dot(p1.astype(jnp.bfloat16), w_ref[6],
                     preferred_element_type=jnp.float32)                 # @ (1-hw)*Wo1

    # ---- mixing + residual + BN1 + FFN + BN3 (eval mode; dropout = identity) ----
    ma = x + heads1 + heads2 * vec_ref[5:6, :]           # hw*heads2 (hw in vec row 5)
    ma = ma * vec_ref[0:1, :] + vec_ref[1:2, :]          # bn1 (folded scale/shift)
    f1 = jnp.dot(ma.astype(jnp.bfloat16), w1t_ref[...],
                 preferred_element_type=jnp.float32) + b1_ref[...]
    f1 = jnp.maximum(f1, 0.0)                            # relu(ff_1)
    f2 = jnp.dot(f1.astype(jnp.bfloat16), w2t_ref[...],
                 preferred_element_type=jnp.float32) + vec_ref[2:3, :]
    f2 = jnp.maximum(f2, 0.0)                            # relu(ff_2), bn2 folded into W2/b2
    out = (ma + f2) * vec_ref[3:4, :] + vec_ref[4:5, :]  # bn3
    out_ref[...] = out.astype(out_ref.dtype)


# ----------------------------------------------------------------------------
# One-time parameter preparation (folding, head concatenation, corr bias, G/GT).
# ----------------------------------------------------------------------------
def prepare_params(p, corr_map):
    H, E, d = p["Wq"].shape
    F = p["W1"].shape[0]
    N = corr_map.shape[0]

    def cat_heads(w):                                    # (H, E, d) -> (E, H*d)
        return jnp.transpose(w, (1, 0, 2)).reshape(E, H * d)

    inv_sqrt_d = 1.0 / math.sqrt(d)
    cw = p["corr_weight"]
    hw = p["h_weight"]

    wstack = jnp.stack([
        cat_heads(p["Wq2"]),
        cat_heads(p["Wk2"]) * inv_sqrt_d,                # fold 1/sqrt(d)
        cat_heads(p["Wv2"]),
        p["Wo2"],
        cat_heads(p["Wq"]),
        cat_heads(p["Wk"]) * ((1.0 - cw) * inv_sqrt_d),  # fold (1-cw)/sqrt(d)
        p["Wo1"] * (1.0 - hw),                           # fold (1-hw)
    ], axis=0).astype(jnp.bfloat16)                      # (7, E, E) bf16 weights

    corr_bias = (corr_map @ p["Cv"]) * (cw / math.sqrt(N))   # (N, N) f32

    def fold_bn(g, b, rm, rv):
        s = g / jnp.sqrt(rv + BN_EPS)
        return s, b - rm * s

    s1, sh1 = fold_bn(p["bn1_g"], p["bn1_b"], p["bn1_rm"], p["bn1_rv"])
    s2, sh2 = fold_bn(p["bn2_g"], p["bn2_b"], p["bn2_rm"], p["bn2_rv"])
    s3, sh3 = fold_bn(p["bn3_g"], p["bn3_b"], p["bn3_rm"], p["bn3_rv"])

    w1t = p["W1"].T.astype(jnp.bfloat16)                 # (E, F) bf16
    w2t = (p["W2"].T * s2[:, None]).astype(jnp.bfloat16) # bn2 scale folded (F, E) bf16
    b2f = sh2 @ p["W2"].T + p["b2"]                      # bn2 shift folded into b2 (E,) f32

    vecE = jnp.stack([s1, sh1, b2f, s3, sh3,
                      jnp.broadcast_to(hw, (E,))], axis=0)   # (6, E) f32
    b1 = p["b1"].reshape(1, F)

    # head-group indicator matrices, hoisted out of the kernel (review item 3)
    G = (jnp.arange(E)[:, None] // d == jnp.arange(H)[None, :]).astype(jnp.float32)
    GT = jnp.transpose(G)

    ops = {"wstack": wstack, "corr_bias": corr_bias, "g": G, "gt": GT,
           "w1t": w1t, "w2t": w2t, "vecE": vecE, "b1": b1}
    return ops, H


# ----------------------------------------------------------------------------
# Forward wrapper: one pallas_call, no grid (whole problem fits in VMEM).
# ----------------------------------------------------------------------------
@functools.partial(jax.jit, static_argnames=("nhead",))
def spectra_forward(x, ops, *, nhead):
    B, N, E = x.shape
    kernel = functools.partial(_fused_spectra_kernel, nhead=nhead)
    out2d = pl.pallas_call(
        kernel,
        out_shape=jax.ShapeDtypeStruct((B * N, E), jnp.float32),
    )(x.reshape(B * N, E), ops["wstack"], ops["corr_bias"], ops["g"], ops["gt"],
      ops["w1t"], ops["w2t"], ops["vecE"], ops["b1"])
    return out2d.reshape(B, N, E)


# ----------------------------------------------------------------------------
# Deterministic parameter init (shapes mirror the PyTorch module __init__)
# ----------------------------------------------------------------------------
def init_params(key, d_model, nhead, band_num, dim_ff):
    d = d_model // nhead
    ks = jax.random.split(key, 32)

    def uni(k, shape, bound):
        return jax.random.uniform(k, shape, jnp.float32, -bound, bound)

    bw = math.sqrt(6.0 / (d_model * d))
    p = {
        "Wq": uni(ks[0], (nhead, d_model, d), bw),
        "Wk": uni(ks[1], (nhead, d_model, d), bw),
        "Wv": uni(ks[2], (nhead, d_model, d), bw),   # declared but unused by forward
        "Wq2": uni(ks[3], (nhead, d_model, d), bw),
        "Wk2": uni(ks[4], (nhead, d_model, d), bw),
        "Wv2": uni(ks[5], (nhead, d_model, d), bw),
        "Cv": uni(ks[6], (band_num, band_num), math.sqrt(6.0 / band_num)),
        "Wo1": uni(ks[7], (d_model, d_model), math.sqrt(6.0 / d_model)),
        "Wo2": uni(ks[8], (d_model, d_model), math.sqrt(6.0 / d_model)),
        "corr_weight": jnp.float32(0.2),
        "h_weight": jnp.float32(0.8),
    }
    lb1 = 1.0 / math.sqrt(d_model)
    lb2 = 1.0 / math.sqrt(dim_ff)
    p["W1"] = uni(ks[9], (dim_ff, d_model), lb1)
    p["b1"] = uni(ks[10], (dim_ff,), lb1)
    p["W2"] = uni(ks[11], (d_model, dim_ff), lb2)
    p["b2"] = uni(ks[12], (d_model,), lb2)

    # BatchNorm (eval mode): randomized affine + running stats, deterministic
    def bn(k, c):
        k1, k2, k3, k4 = jax.random.split(k, 4)
        return (jax.random.uniform(k1, (c,), jnp.float32, 0.5, 1.5),   # gamma
                jax.random.uniform(k2, (c,), jnp.float32, -0.5, 0.5),  # beta
                jax.random.uniform(k3, (c,), jnp.float32, -0.2, 0.2),  # running mean
                jax.random.uniform(k4, (c,), jnp.float32, 0.5, 1.5))   # running var

    p["bn1_g"], p["bn1_b"], p["bn1_rm"], p["bn1_rv"] = bn(ks[13], d_model)
    p["bn2_g"], p["bn2_b"], p["bn2_rm"], p["bn2_rv"] = bn(ks[14], dim_ff)
    p["bn3_g"], p["bn3_b"], p["bn3_rm"], p["bn3_rv"] = bn(ks[15], d_model)
    return p


# ----------------------------------------------------------------------------
# Pure-JAX reference (mirrors the PyTorch code path, cali_spec=None, eval mode)
# ----------------------------------------------------------------------------
def ref_forward(x, corr_map, p):
    B, N, E = x.shape
    H, _, d = p["Wq"].shape
    xh = jnp.broadcast_to(x[:, None, :, :], (B, H, N, E))
    Q2 = jnp.einsum("bhne,hed->bhnd", xh, p["Wq2"]).transpose(2, 1, 0, 3)
    K2 = jnp.einsum("bhne,hed->bhnd", xh, p["Wk2"]).transpose(2, 1, 3, 0)
    V2 = jnp.einsum("bhne,hed->bhnd", xh, p["Wv2"]).transpose(2, 1, 0, 3)
    A2 = jax.nn.softmax(jnp.matmul(Q2, K2) / math.sqrt(d), axis=-1)
    heads2 = jnp.matmul(A2, V2).transpose(2, 0, 1, 3).reshape(B, N, E) @ p["Wo2"]
    hff = jnp.broadcast_to(heads2[:, None, :, :], (B, H, N, E))
    xi = xh + hff
    Qs = jnp.einsum("bhne,hed->bhnd", xi, p["Wq"])
    Ks = jnp.einsum("bhne,hed->bhnd", xi, p["Wk"]).transpose(0, 1, 3, 2)
    Vs = jnp.einsum("bhne,hed->bhnd", xi, p["Wq"])   # Wq used for V in the module
    cw = p["corr_weight"]
    As = (1 - cw) * jnp.matmul(Qs, Ks) / math.sqrt(d) \
        + cw * (corr_map @ p["Cv"]) / math.sqrt(N)
    As = jax.nn.softmax(As, axis=-1)
    heads = jnp.matmul(As, Vs).transpose(0, 2, 1, 3).reshape(B, N, E) @ p["Wo1"]
    hw = p["h_weight"]
    heads_f = (1 - hw) * heads + hw * heads2
    ma = heads_f + x
    ma = (ma - p["bn1_rm"]) / jnp.sqrt(p["bn1_rv"] + BN_EPS) * p["bn1_g"] + p["bn1_b"]
    f = jax.nn.relu(ma @ p["W1"].T + p["b1"])
    f = (f - p["bn2_rm"]) / jnp.sqrt(p["bn2_rv"] + BN_EPS) * p["bn2_g"] + p["bn2_b"]
    f = jax.nn.relu(f @ p["W2"].T + p["b2"])
    ff = ma + f
    return (ff - p["bn3_rm"]) / jnp.sqrt(p["bn3_rv"] + BN_EPS) * p["bn3_g"] + p["bn3_b"]


if __name__ == "__main__":
    B, band_num, d_model, nhead, dim_ff = 2, 8, 32, 4, 64
    key = jax.random.PRNGKey(0)
    kx, kc, kp = jax.random.split(key, 3)
    x = jax.random.normal(kx, (B, band_num, d_model), jnp.float32)
    corr_map = jax.random.normal(kc, (band_num, band_num), jnp.float32)
    params = init_params(kp, d_model, nhead, band_num, dim_ff)

    ops, H = prepare_params(params, corr_map)   # one-time folding (weight-only)
    out = spectra_forward(x, ops, nhead=H)
    out = jax.block_until_ready(out)

    ref = ref_forward(x, corr_map, params)
    # Tolerance accounts for bf16 matmul operands (weights + activation casts,
    # f32 accumulation), approx-reciprocal softmax denominators and the
    # scale-folding into weights; structural errors would be O(1).
    np.testing.assert_allclose(np.asarray(out), np.asarray(ref), rtol=4e-2, atol=4e-2)
    print("KERNEL_OK")
</pallas_src>

<mosaic_0001>
module attributes {stable_mosaic.version = 11 : i64} {
  func.func @_fused_spectra_kernel(%arg0: memref<16x32xf32, #tpu.memory_space<vmem>>, %arg1: memref<7x32x32xbf16, #tpu.memory_space<vmem>>, %arg2: memref<8x8xf32, #tpu.memory_space<vmem>>, %arg3: memref<32x4xf32, #tpu.memory_space<vmem>>, %arg4: memref<4x32xf32, #tpu.memory_space<vmem>>, %arg5: memref<32x64xbf16, #tpu.memory_space<vmem>>, %arg6: memref<64x32xbf16, #tpu.memory_space<vmem>>, %arg7: memref<6x32xf32, #tpu.memory_space<vmem>>, %arg8: memref<1x64xf32, #tpu.memory_space<vmem>>, %arg9: memref<16x32xf32, #tpu.memory_space<vmem>>) attributes {dimension_semantics = [], scalar_prefetch = 0 : i64, scratch_operands = 0 : i64, tpu.core_type = #tpu.core_type<tc>} {
    %c0 = arith.constant 0 : index
    %c0_0 = arith.constant 0 : index
    %0 = vector.load %arg0[%c0, %c0_0] : memref<16x32xf32, #tpu.memory_space<vmem>>, vector<16x32xf32>
    %1 = arith.truncf %0 : vector<16x32xf32> to vector<16x32xbf16>
    %c0_1 = arith.constant 0 : index
    %c0_2 = arith.constant 0 : index
    %c0_3 = arith.constant 0 : index
    %2 = vector.load %arg1[%c0_1, %c0_2, %c0_3] : memref<7x32x32xbf16, #tpu.memory_space<vmem>>, vector<1x32x32xbf16>
    %3 = vector.shape_cast %2 : vector<1x32x32xbf16> to vector<32x32xbf16>
    %cst = arith.constant dense<0.000000e+00> : vector<16x32xf32>
    %4 = tpu.matmul %1, %3, %cst {dimension_numbers = #tpu.dot_dimension_numbers<[1], [0], [0], [1], [0, 0, 1, 1], [], []>} : vector<16x32xbf16>, vector<32x32xbf16>, vector<16x32xf32> -> vector<16x32xf32>
    %c1 = arith.constant 1 : index
    %c0_4 = arith.constant 0 : index
    %c0_5 = arith.constant 0 : index
    %5 = vector.load %arg1[%c1, %c0_4, %c0_5] : memref<7x32x32xbf16, #tpu.memory_space<vmem>>, vector<1x32x32xbf16>
    %6 = vector.shape_cast %5 : vector<1x32x32xbf16> to vector<32x32xbf16>
    %cst_6 = arith.constant dense<0.000000e+00> : vector<16x32xf32>
    %7 = tpu.matmul %1, %6, %cst_6 {dimension_numbers = #tpu.dot_dimension_numbers<[1], [0], [0], [1], [0, 0, 1, 1], [], []>} : vector<16x32xbf16>, vector<32x32xbf16>, vector<16x32xf32> -> vector<16x32xf32>
    %c2 = arith.constant 2 : index
    %c0_7 = arith.constant 0 : index
    %c0_8 = arith.constant 0 : index
    %8 = vector.load %arg1[%c2, %c0_7, %c0_8] : memref<7x32x32xbf16, #tpu.memory_space<vmem>>, vector<1x32x32xbf16>
    %9 = vector.shape_cast %8 : vector<1x32x32xbf16> to vector<32x32xbf16>
    %cst_9 = arith.constant dense<0.000000e+00> : vector<16x32xf32>
    %10 = tpu.matmul %1, %9, %cst_9 {dimension_numbers = #tpu.dot_dimension_numbers<[1], [0], [0], [1], [0, 0, 1, 1], [], []>} : vector<16x32xbf16>, vector<32x32xbf16>, vector<16x32xf32> -> vector<16x32xf32>
    %c0_10 = arith.constant 0 : index
    %c0_11 = arith.constant 0 : index
    %11 = vector.load %arg3[%c0_10, %c0_11] : memref<32x4xf32, #tpu.memory_space<vmem>>, vector<32x4xf32>
    %c0_12 = arith.constant 0 : index
    %c0_13 = arith.constant 0 : index
    %12 = vector.load %arg4[%c0_12, %c0_13] : memref<4x32xf32, #tpu.memory_space<vmem>>, vector<4x32xf32>
    %13 = vector.extract_strided_slice %7 {offsets = [0, 0], sizes = [8, 32], strides = [1, 1]} : vector<16x32xf32> to vector<8x32xf32>
    %14 = tpu.concatenate %13, %13 in 0 : vector<8x32xf32>, vector<8x32xf32> -> vector<16x32xf32>
    %15 = vector.extract_strided_slice %7 {offsets = [8, 0], sizes = [8, 32], strides = [1, 1]} : vector<16x32xf32> to vector<8x32xf32>
    %16 = tpu.concatenate %15, %15 in 0 : vector<8x32xf32>, vector<8x32xf32> -> vector<16x32xf32>
    %17 = vector.extract_strided_slice %10 {offsets = [0, 0], sizes = [8, 32], strides = [1, 1]} : vector<16x32xf32> to vector<8x32xf32>
    %18 = tpu.concatenate %17, %17 in 0 : vector<8x32xf32>, vector<8x32xf32> -> vector<16x32xf32>
    %19 = vector.extract_strided_slice %10 {offsets = [8, 0], sizes = [8, 32], strides = [1, 1]} : vector<16x32xf32> to vector<8x32xf32>
    %20 = tpu.concatenate %19, %19 in 0 : vector<8x32xf32>, vector<8x32xf32> -> vector<16x32xf32>
    %21 = arith.mulf %4, %14 : vector<16x32xf32>
    %cst_14 = arith.constant dense<0.000000e+00> : vector<16x4xf32>
    %22 = tpu.matmul %21, %11, %cst_14 {dimension_numbers = #tpu.dot_dimension_numbers<[1], [0], [0], [1], [0, 0, 1, 1], [], []>} : vector<16x32xf32>, vector<32x4xf32>, vector<16x4xf32> -> vector<16x4xf32>
    %23 = arith.mulf %4, %16 : vector<16x32xf32>
    %cst_15 = arith.constant dense<0.000000e+00> : vector<16x4xf32>
    %24 = tpu.matmul %23, %11, %cst_15 {dimension_numbers = #tpu.dot_dimension_numbers<[1], [0], [0], [1], [0, 0, 1, 1], [], []>} : vector<16x32xf32>, vector<32x4xf32>, vector<16x4xf32> -> vector<16x4xf32>
    %25 = arith.maximumf %22, %24 : vector<16x4xf32>
    %26 = arith.subf %22, %25 : vector<16x4xf32>
    %27 = arith.subf %24, %25 : vector<16x4xf32>
    %28 = tpu.concatenate %26, %27 in 1 : vector<16x4xf32>, vector<16x4xf32> -> vector<16x8xf32>
    %29 = math.exp %28 : vector<16x8xf32>
    %30 = vector.extract_strided_slice %29 {offsets = [0, 0], sizes = [16, 4], strides = [1, 1]} : vector<16x8xf32> to vector<16x4xf32>
    %31 = vector.extract_strided_slice %29 {offsets = [0, 4], sizes = [16, 4], strides = [1, 1]} : vector<16x8xf32> to vector<16x4xf32>
    %32 = arith.addf %30, %31 : vector<16x4xf32>
    %33 = tpu.reciprocal %32 {approx = true} : vector<16x4xf32> -> vector<16x4xf32>
    %34 = vector.extract_strided_slice %29 {offsets = [0, 0], sizes = [16, 4], strides = [1, 1]} : vector<16x8xf32> to vector<16x4xf32>
    %35 = arith.mulf %34, %33 : vector<16x4xf32>
    %cst_16 = arith.constant dense<0.000000e+00> : vector<16x32xf32>
    %36 = tpu.matmul %35, %12, %cst_16 {dimension_numbers = #tpu.dot_dimension_numbers<[1], [0], [0], [1], [0, 0, 1, 1], [], []>} : vector<16x4xf32>, vector<4x32xf32>, vector<16x32xf32> -> vector<16x32xf32>
    %37 = arith.mulf %36, %18 : vector<16x32xf32>
    %38 = vector.extract_strided_slice %29 {offsets = [0, 4], sizes = [16, 4], strides = [1, 1]} : vector<16x8xf32> to vector<16x4xf32>
    %39 = arith.mulf %38, %33 : vector<16x4xf32>
    %cst_17 = arith.constant dense<0.000000e+00> : vector<16x32xf32>
    %40 = tpu.matmul %39, %12, %cst_17 {dimension_numbers = #tpu.dot_dimension_numbers<[1], [0], [0], [1], [0, 0, 1, 1], [], []>} : vector<16x4xf32>, vector<4x32xf32>, vector<16x32xf32> -> vector<16x32xf32>
    %41 = arith.mulf %40, %20 : vector<16x32xf32>
    %42 = arith.addf %37, %41 : vector<16x32xf32>
    %43 = arith.truncf %42 : vector<16x32xf32> to vector<16x32xbf16>
    %c3 = arith.constant 3 : index
    %c0_18 = arith.constant 0 : index
    %c0_19 = arith.constant 0 : index
    %44 = vector.load %arg1[%c3, %c0_18, %c0_19] : memref<7x32x32xbf16, #tpu.memory_space<vmem>>, vector<1x32x32xbf16>
    %45 = vector.shape_cast %44 : vector<1x32x32xbf16> to vector<32x32xbf16>
    %cst_20 = arith.constant dense<0.000000e+00> : vector<16x32xf32>
    %46 = tpu.matmul %43, %45, %cst_20 {dimension_numbers = #tpu.dot_dimension_numbers<[1], [0], [0], [1], [0, 0, 1, 1], [], []>} : vector<16x32xbf16>, vector<32x32xbf16>, vector<16x32xf32> -> vector<16x32xf32>
    %47 = arith.addf %0, %46 : vector<16x32xf32>
    %48 = arith.truncf %47 : vector<16x32xf32> to vector<16x32xbf16>
    %c4 = arith.constant 4 : index
    %c0_21 = arith.constant 0 : index
    %c0_22 = arith.constant 0 : index
    %49 = vector.load %arg1[%c4, %c0_21, %c0_22] : memref<7x32x32xbf16, #tpu.memory_space<vmem>>, vector<1x32x32xbf16>
    %50 = vector.shape_cast %49 : vector<1x32x32xbf16> to vector<32x32xbf16>
    %cst_23 = arith.constant dense<0.000000e+00> : vector<16x32xf32>
    %51 = tpu.matmul %48, %50, %cst_23 {dimension_numbers = #tpu.dot_dimension_numbers<[1], [0], [0], [1], [0, 0, 1, 1], [], []>} : vector<16x32xbf16>, vector<32x32xbf16>, vector<16x32xf32> -> vector<16x32xf32>
    %c5 = arith.constant 5 : index
    %c0_24 = arith.constant 0 : index
    %c0_25 = arith.constant 0 : index
    %52 = vector.load %arg1[%c5, %c0_24, %c0_25] : memref<7x32x32xbf16, #tpu.memory_space<vmem>>, vector<1x32x32xbf16>
    %53 = vector.shape_cast %52 : vector<1x32x32xbf16> to vector<32x32xbf16>
    %cst_26 = arith.constant dense<0.000000e+00> : vector<16x32xf32>
    %54 = tpu.matmul %48, %53, %cst_26 {dimension_numbers = #tpu.dot_dimension_numbers<[1], [0], [0], [1], [0, 0, 1, 1], [], []>} : vector<16x32xbf16>, vector<32x32xbf16>, vector<16x32xf32> -> vector<16x32xf32>
    %55 = vector.extract_strided_slice %51 {offsets = [0, 0], sizes = [16, 8], strides = [1, 1]} : vector<16x32xf32> to vector<16x8xf32>
    %56 = vector.shape_cast %55 : vector<16x8xf32> to vector<2x8x8xf32>
    %57 = vector.extract_strided_slice %51 {offsets = [0, 8], sizes = [16, 8], strides = [1, 1]} : vector<16x32xf32> to vector<16x8xf32>
    %58 = vector.shape_cast %57 : vector<16x8xf32> to vector<2x8x8xf32>
    %59 = vector.extract_strided_slice %51 {offsets = [0, 16], sizes = [16, 8], strides = [1, 1]} : vector<16x32xf32> to vector<16x8xf32>
    %60 = vector.shape_cast %59 : vector<16x8xf32> to vector<2x8x8xf32>
    %61 = vector.extract_strided_slice %51 {offsets = [0, 24], sizes = [16, 8], strides = [1, 1]} : vector<16x32xf32> to vector<16x8xf32>
    %62 = vector.shape_cast %61 : vector<16x8xf32> to vector<2x8x8xf32>
    %63 = tpu.concatenate %56, %58, %60, %62 in 0 : vector<2x8x8xf32>, vector<2x8x8xf32>, vector<2x8x8xf32>, vector<2x8x8xf32> -> vector<8x8x8xf32>
    %64 = vector.extract_strided_slice %54 {offsets = [0, 0], sizes = [16, 8], strides = [1, 1]} : vector<16x32xf32> to vector<16x8xf32>
    %65 = vector.shape_cast %64 : vector<16x8xf32> to vector<2x8x8xf32>
    %66 = vector.extract_strided_slice %54 {offsets = [0, 8], sizes = [16, 8], strides = [1, 1]} : vector<16x32xf32> to vector<16x8xf32>
    %67 = vector.shape_cast %66 : vector<16x8xf32> to vector<2x8x8xf32>
    %68 = vector.extract_strided_slice %54 {offsets = [0, 16], sizes = [16, 8], strides = [1, 1]} : vector<16x32xf32> to vector<16x8xf32>
    %69 = vector.shape_cast %68 : vector<16x8xf32> to vector<2x8x8xf32>
    %70 = vector.extract_strided_slice %54 {offsets = [0, 24], sizes = [16, 8], strides = [1, 1]} : vector<16x32xf32> to vector<16x8xf32>
    %71 = vector.shape_cast %70 : vector<16x8xf32> to vector<2x8x8xf32>
    %72 = tpu.concatenate %65, %67, %69, %71 in 0 : vector<2x8x8xf32>, vector<2x8x8xf32>, vector<2x8x8xf32>, vector<2x8x8xf32> -> vector<8x8x8xf32>
    "tpu.trace_start"() <{level = 10 : i32, message = "znd,zmd->znm"}> : () -> ()
    %cst_27 = arith.constant dense<0.000000e+00> : vector<8x8x8xf32>
    %73 = tpu.matmul %63, %72, %cst_27 {dimension_numbers = #tpu.dot_dimension_numbers<[2], [2], [1], [1], [0, 0, 0, 1, 1, 1], [0], [0]>} : vector<8x8x8xf32>, vector<8x8x8xf32>, vector<8x8x8xf32> -> vector<8x8x8xf32>
    "tpu.trace_stop"() : () -> ()
    %c0_28 = arith.constant 0 : index
    %c0_29 = arith.constant 0 : index
    %74 = vector.load %arg2[%c0_28, %c0_29] : memref<8x8xf32, #tpu.memory_space<vmem>>, vector<8x8xf32>
    %75 = vector.shape_cast %74 : vector<8x8xf32> to vector<1x8x8xf32>
    %76 = vector.broadcast %75 : vector<1x8x8xf32> to vector<8x8x8xf32>
    %77 = arith.addf %73, %76 : vector<8x8x8xf32>
    %cst_30 = arith.constant dense<0xFF800000> : vector<8x8xf32>
    %78 = vector.multi_reduction <maximumf>, %77, %cst_30 [2] : vector<8x8x8xf32> to vector<8x8xf32>
    %79 = vector.shape_cast %78 : vector<8x8xf32> to vector<8x8x1xf32>
    %80 = vector.broadcast %79 : vector<8x8x1xf32> to vector<8x8x8xf32>
    %81 = arith.subf %77, %80 : vector<8x8x8xf32>
    %82 = math.exp %81 : vector<8x8x8xf32>
    %cst_31 = arith.constant dense<0.000000e+00> : vector<8x8xf32>
    %83 = vector.multi_reduction <add>, %82, %cst_31 [2] : vector<8x8x8xf32> to vector<8x8xf32>
    %84 = vector.shape_cast %83 : vector<8x8xf32> to vector<8x8x1xf32>
    %85 = tpu.reciprocal %84 {approx = true} : vector<8x8x1xf32> -> vector<8x8x1xf32>
    %86 = vector.broadcast %85 : vector<8x8x1xf32> to vector<8x8x8xf32>
    %87 = arith.mulf %82, %86 : vector<8x8x8xf32>
    "tpu.trace_start"() <{level = 10 : i32, message = "znm,zmd->znd"}> : () -> ()
    %cst_32 = arith.constant dense<0.000000e+00> : vector<8x8x8xf32>
    %88 = tpu.matmul %87, %63, %cst_32 {dimension_numbers = #tpu.dot_dimension_numbers<[2], [1], [1], [2], [0, 0, 0, 1, 1, 2], [0], [0]>} : vector<8x8x8xf32>, vector<8x8x8xf32>, vector<8x8x8xf32> -> vector<8x8x8xf32>
    "tpu.trace_stop"() : () -> ()
    %89 = vector.extract_strided_slice %88 {offsets = [0, 0, 0], sizes = [2, 8, 8], strides = [1, 1, 1]} : vector<8x8x8xf32> to vector<2x8x8xf32>
    %90 = vector.shape_cast %89 : vector<2x8x8xf32> to vector<16x8xf32>
    %91 = vector.extract_strided_slice %88 {offsets = [2, 0, 0], sizes = [2, 8, 8], strides = [1, 1, 1]} : vector<8x8x8xf32> to vector<2x8x8xf32>
    %92 = vector.shape_cast %91 : vector<2x8x8xf32> to vector<16x8xf32>
    %93 = vector.extract_strided_slice %88 {offsets = [4, 0, 0], sizes = [2, 8, 8], strides = [1, 1, 1]} : vector<8x8x8xf32> to vector<2x8x8xf32>
    %94 = vector.shape_cast %93 : vector<2x8x8xf32> to vector<16x8xf32>
    %95 = vector.extract_strided_slice %88 {offsets = [6, 0, 0], sizes = [2, 8, 8], strides = [1, 1, 1]} : vector<8x8x8xf32> to vector<2x8x8xf32>
    %96 = vector.shape_cast %95 : vector<2x8x8xf32> to vector<16x8xf32>
    %97 = tpu.concatenate %90, %92, %94, %96 in 1 : vector<16x8xf32>, vector<16x8xf32>, vector<16x8xf32>, vector<16x8xf32> -> vector<16x32xf32>
    %98 = arith.truncf %97 : vector<16x32xf32> to vector<16x32xbf16>
    %c6 = arith.constant 6 : index
    %c0_33 = arith.constant 0 : index
    %c0_34 = arith.constant 0 : index
    %99 = vector.load %arg1[%c6, %c0_33, %c0_34] : memref<7x32x32xbf16, #tpu.memory_space<vmem>>, vector<1x32x32xbf16>
    %100 = vector.shape_cast %99 : vector<1x32x32xbf16> to vector<32x32xbf16>
    %cst_35 = arith.constant dense<0.000000e+00> : vector<16x32xf32>
    %101 = tpu.matmul %98, %100, %cst_35 {dimension_numbers = #tpu.dot_dimension_numbers<[1], [0], [0], [1], [0, 0, 1, 1], [], []>} : vector<16x32xbf16>, vector<32x32xbf16>, vector<16x32xf32> -> vector<16x32xf32>
    %102 = arith.addf %0, %101 : vector<16x32xf32>
    %c5_36 = arith.constant 5 : index
    %c0_37 = arith.constant 0 : index
    %103 = vector.load %arg7[%c5_36, %c0_37] : memref<6x32xf32, #tpu.memory_space<vmem>>, vector<1x32xf32>
    %104 = vector.broadcast %103 : vector<1x32xf32> to vector<16x32xf32>
    %105 = arith.mulf %46, %104 : vector<16x32xf32>
    %106 = arith.addf %102, %105 : vector<16x32xf32>
    %c0_38 = arith.constant 0 : index
    %c0_39 = arith.constant 0 : index
    %107 = vector.load %arg7[%c0_38, %c0_39] : memref<6x32xf32, #tpu.memory_space<vmem>>, vector<1x32xf32>
    %108 = vector.broadcast %107 : vector<1x32xf32> to vector<16x32xf32>
    %109 = arith.mulf %106, %108 : vector<16x32xf32>
    %c1_40 = arith.constant 1 : index
    %c0_41 = arith.constant 0 : index
    %110 = vector.load %arg7[%c1_40, %c0_41] : memref<6x32xf32, #tpu.memory_space<vmem>>, vector<1x32xf32>
    %111 = vector.broadcast %110 : vector<1x32xf32> to vector<16x32xf32>
    %112 = arith.addf %109, %111 : vector<16x32xf32>
    %113 = arith.truncf %112 : vector<16x32xf32> to vector<16x32xbf16>
    %c0_42 = arith.constant 0 : index
    %c0_43 = arith.constant 0 : index
    %114 = vector.load %arg5[%c0_42, %c0_43] : memref<32x64xbf16, #tpu.memory_space<vmem>>, vector<32x64xbf16>
    %cst_44 = arith.constant dense<0.000000e+00> : vector<16x64xf32>
    %115 = tpu.matmul %113, %114, %cst_44 {dimension_numbers = #tpu.dot_dimension_numbers<[1], [0], [0], [1], [0, 0, 1, 1], [], []>} : vector<16x32xbf16>, vector<32x64xbf16>, vector<16x64xf32> -> vector<16x64xf32>
    %c0_45 = arith.constant 0 : index
    %c0_46 = arith.constant 0 : index
    %116 = vector.load %arg8[%c0_45, %c0_46] : memref<1x64xf32, #tpu.memory_space<vmem>>, vector<1x64xf32>
    %117 = vector.broadcast %116 : vector<1x64xf32> to vector<16x64xf32>
    %118 = arith.addf %115, %117 : vector<16x64xf32>
    %cst_47 = arith.constant 0.000000e+00 : f32
    %119 = vector.broadcast %cst_47 : f32 to vector<16x64xf32>
    %120 = arith.maximumf %118, %119 : vector<16x64xf32>
    %121 = arith.truncf %120 : vector<16x64xf32> to vector<16x64xbf16>
    %c0_48 = arith.constant 0 : index
    %c0_49 = arith.constant 0 : index
    %122 = vector.load %arg6[%c0_48, %c0_49] : memref<64x32xbf16, #tpu.memory_space<vmem>>, vector<64x32xbf16>
    %cst_50 = arith.constant dense<0.000000e+00> : vector<16x32xf32>
    %123 = tpu.matmul %121, %122, %cst_50 {dimension_numbers = #tpu.dot_dimension_numbers<[1], [0], [0], [1], [0, 0, 1, 1], [], []>} : vector<16x64xbf16>, vector<64x32xbf16>, vector<16x32xf32> -> vector<16x32xf32>
    %c2_51 = arith.constant 2 : index
    %c0_52 = arith.constant 0 : index
    %124 = vector.load %arg7[%c2_51, %c0_52] : memref<6x32xf32, #tpu.memory_space<vmem>>, vector<1x32xf32>
    %125 = vector.broadcast %124 : vector<1x32xf32> to vector<16x32xf32>
    %126 = arith.addf %123, %125 : vector<16x32xf32>
    %cst_53 = arith.constant 0.000000e+00 : f32
    %127 = vector.broadcast %cst_53 : f32 to vector<16x32xf32>
    %128 = arith.maximumf %126, %127 : vector<16x32xf32>
    %129 = arith.addf %112, %128 : vector<16x32xf32>
    %c3_54 = arith.constant 3 : index
    %c0_55 = arith.constant 0 : index
    %130 = vector.load %arg7[%c3_54, %c0_55] : memref<6x32xf32, #tpu.memory_space<vmem>>, vector<1x32xf32>
    %131 = vector.broadcast %130 : vector<1x32xf32> to vector<16x32xf32>
    %132 = arith.mulf %129, %131 : vector<16x32xf32>
    %c4_56 = arith.constant 4 : index
    %c0_57 = arith.constant 0 : index
    %133 = vector.load %arg7[%c4_56, %c0_57] : memref<6x32xf32, #tpu.memory_space<vmem>>, vector<1x32xf32>
    %134 = vector.broadcast %133 : vector<1x32xf32> to vector<16x32xf32>
    %135 = arith.addf %132, %134 : vector<16x32xf32>
    %c0_58 = arith.constant 0 : index
    %c0_59 = arith.constant 0 : index
    %136 = vector.load %arg9[%c0_58, %c0_59] : memref<16x32xf32, #tpu.memory_space<vmem>>, vector<16x32xf32>
    tpu.vector_store %arg9[%c0_58, %c0_59], %135 {strides = array<i32>} : memref<16x32xf32, #tpu.memory_space<vmem>>, vector<16x32xf32>,
    return
  }
}

</mosaic_0001>

<bundles_post_ra>
// kernel: spectra_forward.1
= control target key start
LH: loop header
LB: loop body
LE: loop exit
PB: predicated region body
PF: predicated region fallthrough
CT: control target
= control target key end

     0   :  { %14 = vsyncpa [#allocation3], 0  ;;  %s3225_s0 = inlined_call_operand.vmem [shape: f32[16,32], index: 0, kind: input, shape index: {}]   ;;  %s3226_s1 = inlined_call_operand.hbm [shape: bf16[7,32,32], index: 1, kind: input, shape index: {}]   ;;  %s3227_s2 = inlined_call_operand.vmem [shape: f32[8,8], index: 2, kind: input, shape index: {}]   ;;  %s3228_s3 = inlined_call_operand.vmem [shape: f32[32,4], index: 3, kind: input, shape index: {}]   ;;  %s3229_s4 = inlined_call_operand.vmem [shape: f32[4,32], index: 4, kind: input, shape index: {}]   ;;  %s3230_s5 = inlined_call_operand.vmem [shape: bf16[32,64], index: 5, kind: input, shape index: {}]   ;;  %s3231_s6 = inlined_call_operand.vmem [shape: bf16[64,32], index: 6, kind: input, shape index: {}]   ;;  %s3232_s7 = inlined_call_operand.vmem [shape: f32[6,32], index: 7, kind: input, shape index: {}]   ;;  %s3233_s8 = inlined_call_operand.vmem [shape: f32[1,64], index: 8, kind: input, shape index: {}]   ;;  %s3234_s9 = inlined_call_operand.hbm [shape: f32[16,32], index: 9, kind: output, shape index: {}]  }
   0x1   :  { %15 = vsyncpa [#allocation4], 0  ;;  %s2883_s30 = smov [#allocation2]  }
   0x2   :  { %s23_s10 = sshll.u32 %s2883_s30, 4  ;;  %s24_s10 = int_to_ptr.vmem [resolvable:$true] %s23_s10 }
   0x3   :  { %s2847_s11 = scalar_lea.vmem %s24_s10, 1792  ;;  %p2852_p1 = scmp.lt.s32.totalorder %s24_s10, %s24_s10 }
   0x4   :  { %p2848_p0 = scmp.ne.s32.totalorder %s24_s10, %s2847_s11  ;;  %p2853_p2 = scmp.lt.s32.totalorder %s2847_s11, %s2847_s11 }
   0x6   :  { %p2854_p3 = por %p2853_p2, %p2852_p1 }
   0x8   :  { %p2855_p4 = pnand %p2854_p3, %p2848_p0 }
   0xa   :  { %2858 = shalt.err (!%p2855_p4)
}
   0xb   :  { %s2884_s12 = smov 64   ;;  %s2885_s13 = smov 4  }
   0xc   :  { %29 = dma.hbm_to_vmem [thread:$0]  %s3226_s1, 1792, %s24_s10, [#allocation3], %s2884_s12, %s2884_s12, %s2885_s13  }
   0xd   :  { %2879 = dma.done.wait [#allocation3], 1792  }
   0xe   :  { %2880 = vsyncadd [#allocation3], 4294965504  ;;  %v2886_v0 = vmov 0.0   ;;  %vm2887_vm0 = vmmov 0   ;;  %v2779_v1 = vld [vmem:[#allocation2 + $0x8] sm:$0xff]   ;;  %v2780_v2 = vld [vmem:[#allocation2] sm:$0xff]  }
   0xf   :  { %2562 = vmatprep.subr.bf16.mxu1 %v2886_v0  ;;  %2566 = vmatprep.mubr.msk.bf16.mxu1 %vm2887_vm0, %v2886_v0  ;;  %v2960_v3 = vld [vmem:[%s3225_s0] sm:$0xff]  ;;  %v2965_v4 = vld [vmem:[%s3225_s0 + $0x8] sm:$0xff]  ;;  %v2781_v5 = vld [vmem:[#allocation2 + $0x18] sm:$0xff]   ;;  %vm67_vm1 = vcmask 261120   ;;  %vm413_vm2 = vcmask 31744   ;;  %vm440_vm3 = vcmask 1043456  }
  0x10   :  { %2578 = vmatprep.subr.bf16.mxu0 %v2886_v0  ;;  %2582 = vmatprep.mubr.msk.bf16.mxu0 %vm2887_vm0, %v2886_v0  ;;  %v50_v6 = vpack.c.bf16 %v2965_v4, %v2960_v3  ;;  %v2783_v7 = vld [vmem:[#allocation2 + $0x28] sm:$0xff]   ;;  %v2782_v8 = vld [vmem:[#allocation2 + $0x10] sm:$0xff]   ;;  %v2784_v9 = vld [vmem:[#allocation2 + $0x20] sm:$0xff]   ;;  %vm839_vm4 = vcmask 64512   ;;  %s2890_s28 = smov 112   ;;  %s2891_s29 = smov 104  }
  0x11   :  { %2563 = vmatpush3.bf16.msra.mxu1 %v2779_v1  ;;  %2579 = vmatpush3.bf16.msra.mxu0 %v2783_v7  ;;  %v231_v10 = vld [vmem:[%s3228_s3 + $0x18] sm:$0xff]  ;;  %v230_v11 = vld [vmem:[%s3228_s3 + $0x10] sm:$0xff]  ;;  %v229_v12 = vld [vmem:[%s3228_s3 + $0x8] sm:$0xff]  ;;  %s2893_s11 = smov 16   ;;  %s2894_s12 = smov 24   ;;  %vm2130_vm5 = vcmask 130048  }
  0x12   :  { %2564 = vmatprep.subr.bf16.mxu1 %v2886_v0  ;;  %2580 = vmatprep.subr.bf16.mxu0 %v2886_v0  ;;  %v228_v13 = vld [vmem:[%s3228_s3] sm:$0xff]  ;;  %s2888_s3 = smov 124   ;;  %v2785_v63 = vld [vmem:[#allocation2 + $0x38] sm:$0xff]   ;;  %v2786_v1 = vld [vmem:[#allocation2 + $0x30] sm:$0xff]   ;;  %vm2133_vm6 = vcmask 195584   ;;  %vm2331_vm7 = vcmask 523264  }
  0x13   :  { %v232_v48 = vld [vmem:[%s3229_s4] sm:$0xf]  ;;  %s2889_s4 = smov 120  }
  0x15   :  { %2565 = vmatpush3.bf16.msra.mxu1 %v2780_v2  ;;  %2581 = vmatpush3.bf16.msra.mxu0 %v2784_v9 }
  0x16   :  { %2570 = vmatprep.subr.bf16.mxu1 %v2886_v0  ;;  %2597 = vmatprep.subr.mxu0 %v231_v10 }
  0x18   :  { %2567 = vmatmul.mubr.msk.bf16.vlgmr.msra.gmra.mxu1 %vm67_vm1, %v50_v6  ;;  %2583 = vmatmul.mubr.msk.bf16.vlgmr.msra.gmra.mxu0 %vm67_vm1, %v50_v6 }
  0x19   :  { %2571 = vmatpush3.bf16.msra.mxu1 %v2781_v5  ;;  %2574 = vmatprep.mubr.msk.bf16.mxu1 %vm2887_vm0, %v2886_v0 }
  0x1a   :  { %2572 = vmatprep.subr.bf16.mxu1 %v2886_v0  ;;  %2598 = vmatpush3.msra.mxu0 %v231_v10 }
  0x1b   :  { %2599 = vmatprep.subr.mxu0 %v230_v11 }
  0x1c   :  { %2600 = vmatpush3.msra.mxu0 %v230_v11 }
  0x1d   :  { %2573 = vmatpush3.bf16.msra.mxu1 %v2782_v8  ;;  %2601 = vmatprep.subr.mxu0 %v229_v12 }
  0x1e   :  { %2586 = vmatprep.subr.mxu1 %v231_v10  ;;  %2602 = vmatpush3.msra.mxu0 %v229_v12 }
  0x1f   :  { %2603 = vmatprep.subr.mxu0 %v228_v13 }
  0x20   :  { %2575 = vmatmul.mubr.msk.bf16.vlgmr.msra.gmra.mxu1 %vm67_vm1, %v50_v6  ;;  %2604 = vmatpush3.msra.mxu0 %v228_v13 }
  0x21   :  { %2587 = vmatpush3.msra.mxu1 %v231_v10  ;;  %2618 = vmatprep.subr.bf16.mxu0 %v2886_v0 }
  0x22   :  { %2588 = vmatprep.subr.mxu1 %v230_v11 }
  0x23   :  { %2589 = vmatpush3.msra.mxu1 %v230_v11 }
  0x24   :  { %2590 = vmatprep.subr.mxu1 %v229_v12 }
  0x25   :  { %2591 = vmatpush3.msra.mxu1 %v229_v12 }
  0x26   :  { %2592 = vmatprep.subr.mxu1 %v228_v13 }
  0x27   :  { %2593 = vmatpush3.msra.mxu1 %v228_v13 }
  0x28   :  { %2608 = vmatprep.subr.msk.mxu1 %vm440_vm3, %v232_v48 }
  0xd8   :  { %v105_v14 = vpop.f32.mrf.mxu1  ;;  %v2997_v26 = vpop.f32.mrf.mxu0 }
  0xda   :  { %v2568_v15 = vpop.f32.mrf.mxu1  ;;  %v2584_v27 = vpop.f32.mrf.mxu0 }
  0xdb   :  { %v2787_v15 = vld [vmem:[#allocation2 + $0x48] sm:$0xff]  }
  0xdc   :  { %v108_v16 = vpop.f32.mrf.mxu1  ;;  %v2999_v28 = vpop.f32.mrf.mxu0 }
  0xde   :  { %v2569_v17 = vpop.f32.mrf.mxu1  ;;  %v2585_v29 = vpop.f32.mrf.mxu0 }
  0xdf   :  { %v2789_v17 = vld [vmem:[#allocation2 + $0x40] sm:$0xff]  }
  0xe0   :  { %v163_v18 = vpop.f32.mrf.mxu1 }
  0xe1   :  { %v233_v19 = vmul.f32 %v163_v18, %v105_v14  ;;  %v234_v20 = vmul.f32 %v163_v18, %v108_v16  ;;  %v2790_v18 = vld [vmem:[#allocation2 + $0x50] sm:$0xff]  }
  0xe2   :  { %v2576_v21 = vpop.f32.mrf.mxu1 }
  0xe3   :  { %2594 = vmatprep.mubr.msk.f32.mxu1 %vm67_vm1, %v233_v19 }
  0xe4   :  { %v166_v22 = vpop.f32.mrf.mxu1  ;;  %2595 = vmatmul.mubr.msk.f32.vlgmr.msra.gmra.mxu1 %vm67_vm1, %v234_v20 }
  0xe5   :  { %v316_v23 = vmul.f32 %v166_v22, %v105_v14  ;;  %v317_v24 = vmul.f32 %v166_v22, %v108_v16  ;;  %2609 = vmatpush3.msk.msra.mxu1 %vm440_vm3, %v232_v48  ;;  %v2788_v16 = vld [vmem:[#allocation2 + $0x58] sm:$0xff]  }
  0xe6   :  { %v2577_v25 = vpop.f32.mrf.mxu1  ;;  %2613 = vmatprep.subr.msk.mxu1 %vm440_vm3, %v232_v48 }
  0xe7   :  { %2605 = vmatprep.mubr.msk.f32.mxu0 %vm67_vm1, %v316_v23 }
  0xe8   :  { %2606 = vmatmul.mubr.msk.f32.vlgmr.msra.gmra.mxu0 %vm67_vm1, %v317_v24 }
  0xe9   :  { %2622 = vmatprep.mubr.msk.bf16.mxu0 %vm2887_vm0, %v2886_v0  ;;  %2619 = vmatpush3.bf16.msra.mxu0 %v2785_v63 }
  0xea   :  { %2620 = vmatprep.subr.bf16.mxu0 %v2886_v0 }
  0xed   :  { %2621 = vmatpush3.bf16.msra.mxu0 %v2786_v1 }
  0xee   :  { %2634 = vmatprep.subr.bf16.mxu0 %v2886_v0 }
 0x1a4   :  { %v2596_v30 = vpop.f32.mrf.mxu1 }
 0x1a6   :  { %v307_v33 = vpop.f32.mrf.mxu1 }
 0x1a8   :  { %v2607_v31 = vpop.f32.mrf.mxu0 }
 0x1a9   :  { %v400_v32 = vmax.f32 %v2596_v30, %v2607_v31 }
 0x1aa   :  { %v390_v34 = vpop.f32.mrf.mxu0 }
 0x1ab   :  { %v402_v35 = vsub.f32 %v2596_v30, %v400_v32  ;;  %v399_v36 = vmax.f32 %v307_v33, %v390_v34  ;;  %v404_v38 = vsub.f32 %v2607_v31, %v400_v32 }
 0x1ad   :  { %v403_v37 = vsub.f32 %v390_v34, %v399_v36  ;;  %v401_v39 = vsub.f32 %v307_v33, %v399_v36 }
 0x1af   :  { %407 = vrot.lane.b32.xlu0 %v403_v37, %s2885_s13 }
 0x1b3   :  { %409 = vrot.lane.b32.xlu0 %v404_v38, %s2885_s13 }
 0x221   :  { %v408_v40 = vpop.permute.xlu0 %407 }
 0x222   :  { %v414_v41 = vsel %vm413_vm2, %v401_v39, %v408_v40 }
 0x223   :  { %v416_v42 = vmul.f32 1.442695, %v414_v41 }
 0x225   :  { %2799 = vpow2.f32 %v416_v42  ;;  %v410_v43 = vpop.permute.xlu0 %409 }
 0x226   :  { %v415_v44 = vsel %vm413_vm2, %v402_v35, %v410_v43 }
 0x227   :  { %v418_v45 = vmul.f32 1.442695, %v415_v44 }
 0x229   :  { %2801 = vpow2.f32 %v418_v45 }
 0x232   :  { %v2800_v46 = vpop.eup %2799 }
 0x233   :  { %422 = vrot.lane.b32.xlu1 %v2800_v46, %s2888_s3 }
 0x236   :  { %v2802_v47 = vpop.eup %2801 }
 0x237   :  { %424 = vrot.lane.b32.xlu1 %v2802_v47, %s2888_s3 }
 0x2a5   :  { %v423_v49 = vpop.permute.xlu1 %422 }
 0x2a6   :  { %v428_v50 = vadd.f32 %v2800_v46, %v423_v49 }
 0x2a8   :  { %2803 = vrcp.f32 %v428_v50 }
 0x2a9   :  { %v425_v51 = vpop.permute.xlu1 %424 }
 0x2aa   :  { %v429_v52 = vadd.f32 %v2802_v47, %v425_v51 }
 0x2ac   :  { %2805 = vrcp.f32 %v429_v52 }
 0x2b5   :  { %v2804_v53 = vpop.eup %2803 }
 0x2b6   :  { %523 = vrot.lane.b32.xlu0 %v2804_v53, %s2885_s13  ;;  %v432_v54 = vmul.f32 %v2804_v53, %v2800_v46 }
 0x2b8   :  { %2610 = vmatprep.mubr.msk.f32.mxu1 %vm413_vm2, %v432_v54 }
 0x2b9   :  { %v2806_v55 = vpop.eup %2805 }
 0x2ba   :  { %525 = vrot.lane.b32.xlu1 %v2806_v55, %s2885_s13  ;;  %v433_v56 = vmul.f32 %v2806_v55, %v2802_v47 }
 0x2bc   :  { %2611 = vmatmul.mubr.msk.f32.vlgmr.msra.gmra.mxu1 %vm413_vm2, %v433_v56 }
 0x2bd   :  { %2614 = vmatpush3.msk.msra.mxu1 %vm440_vm3, %v232_v48 }
 0x2be   :  { %2626 = vmatprep.subr.bf16.mxu1 %v2886_v0 }
 0x328   :  { %v524_v57 = vpop.permute.xlu0 %523 }
 0x329   :  { %v529_v58 = vmul.f32 %v2800_v46, %v524_v57  ;;  %v838_v46 = vld [vmem:[%s3227_s2] sm:$0xff]  ;;  %s2892_s2 = smov 8  }
 0x32b   :  { %533 = vrot.lane.b32.xlu0 %v529_v58, %s2888_s3 }
 0x32c   :  { %v526_v59 = vpop.permute.xlu1 %525 }
 0x32d   :  { %v530_v60 = vmul.f32 %v2802_v47, %v526_v59 }
 0x32f   :  { %535 = vrot.lane.b32.xlu1 %v530_v60, %s2888_s3 }
 0x37c   :  { %v2612_v2 = vpop.f32.mrf.mxu1 }
 0x37d   :  { %v520_v9 = vmul.f32 %v2612_v2, %v2997_v26 }
 0x37e   :  { %v510_v5 = vpop.f32.mrf.mxu1 }
 0x37f   :  { %v519_v10 = vmul.f32 %v510_v5, %v2997_v26 }
 0x39d   :  { %v534_v61 = vpop.permute.xlu0 %533 }
 0x39e   :  { %2615 = vmatprep.mubr.msk.f32.mxu1 %vm413_vm2, %v534_v61 }
 0x3a1   :  { %v536_v62 = vpop.permute.xlu1 %535 }
 0x3a2   :  { %2616 = vmatmul.mubr.msk.f32.vlgmr.msra.gmra.mxu1 %vm413_vm2, %v536_v62 }
 0x3a3   :  { %2630 = vmatprep.mubr.msk.bf16.mxu1 %vm2887_vm0, %v2886_v0  ;;  %2627 = vmatpush3.bf16.msra.mxu1 %v2787_v15 }
 0x3a4   :  { %2628 = vmatprep.subr.bf16.mxu1 %v2886_v0 }
 0x3a7   :  { %2629 = vmatpush3.bf16.msra.mxu1 %v2789_v17 }
 0x3a8   :  { %2642 = vmatprep.subr.mxu1 %v2886_v0 }
 0x462   :  { %v2617_v6 = vpop.f32.mrf.mxu1 }
 0x463   :  { %v617_v7 = vmul.f32 %v2617_v6, %v2999_v28 }
 0x464   :  { %v607_v8 = vpop.f32.mrf.mxu1 }
 0x465   :  { %v616_v11 = vmul.f32 %v607_v8, %v2999_v28  ;;  %v619_v12 = vadd.f32 %v617_v7, %v520_v9 }
 0x467   :  { %v618_v13 = vadd.f32 %v616_v11, %v519_v10 }
 0x469   :  { %v620_v14 = vpack.c.bf16 %v619_v12, %v618_v13 }
 0x46b   :  { %2623 = vmatmul.mubr.msk.bf16.vlgmr.msra.gmra.mxu0 %vm67_vm1, %v620_v14 }
 0x46c   :  { %2638 = vmatprep.mubr.msk.bf16.mxu0 %vm2887_vm0, %v2886_v0  ;;  %2635 = vmatpush3.bf16.msra.mxu0 %v2788_v16 }
 0x46d   :  { %2636 = vmatprep.subr.bf16.mxu0 %v2886_v0 }
 0x470   :  { %2637 = vmatpush3.bf16.msra.mxu0 %v2790_v18 }
 0x471   :  { %2652 = vmatprep.subr.mxu0 %v2886_v0 }
 0x52b   :  { %v3034_v19 = vpop.f32.mrf.mxu0 }
 0x52c   :  { %v682_v22 = vadd.f32 %v3034_v19, %v2960_v3 }
 0x52d   :  { %v2624_v20 = vpop.f32.mrf.mxu0 }
 0x52f   :  { %v3036_v21 = vpop.f32.mrf.mxu0 }
 0x530   :  { %v683_v23 = vadd.f32 %v3036_v21, %v2965_v4 }
 0x531   :  { %v2625_v24 = vpop.f32.mrf.mxu0 }
 0x532   :  { %v684_v25 = vpack.c.bf16 %v683_v23, %v682_v22 }
 0x534   :  { %2631 = vmatmul.mubr.msk.bf16.vlgmr.msra.gmra.mxu1 %vm67_vm1, %v684_v25  ;;  %2639 = vmatmul.mubr.msk.bf16.vlgmr.msra.gmra.mxu0 %vm67_vm1, %v684_v25 }
 0x535   :  { %2644 = vmatprep.mubr.msk.f32.mxu1 %vm2887_vm0, %v2886_v0  ;;  %2654 = vmatprep.mubr.msk.f32.mxu0 %vm2887_vm0, %v2886_v0 }
 0x5f4   :  { %v739_v26 = vpop.f32.mrf.mxu1  ;;  %v797_v27 = vpop.f32.mrf.mxu0 }
 0x5f5   :  { %826 = vrot.lane.b32.xlu0 %v797_v27, %s2889_s4  ;;  %2643 = vmatpush3.xpose.msk.msra.mxu1 %vm839_vm4, %v797_v27 }
 0x5f6   :  { %v2632_v28 = vpop.f32.mrf.mxu1  ;;  %v2640_v29 = vpop.f32.mrf.mxu0  ;;  %2647 = vmatprep.subr.mxu1 %v2886_v0 }
 0x5f8   :  { %v742_v30 = vpop.f32.mrf.mxu1  ;;  %v800_v31 = vpop.f32.mrf.mxu0  ;;  %2645 = vmatmul.mubr.msk.f32.vlgmr.msra.gmra.mxu1 %vm839_vm4, %v739_v26 }
 0x5f9   :  { %806 = vrot.lane.b32.xlu0 %v739_v26, %s2889_s4  ;;  %828 = vrot.lane.b32.xlu1 %v800_v31, %s2889_s4 }
 0x5fa   :  { %2648 = vmatpush3.xpose.msk.msra.mxu1 %vm839_vm4, %v800_v31  ;;  %v2633_v32 = vpop.f32.mrf.mxu1  ;;  %v2641_v33 = vpop.f32.mrf.mxu0  ;;  %2649 = vmatprep.mubr.msk.f32.mxu1 %vm2887_vm0, %v2886_v0 }
 0x5fb   :  { %2657 = vmatprep.subr.mxu1 %v2886_v0 }
 0x5fd   :  { %2650 = vmatmul.mubr.msk.f32.vlgmr.msra.gmra.mxu1 %vm839_vm4, %v742_v30  ;;  %830 = vrot.lane.b32.xlu0 %v797_v27, %s2890_s28 }
 0x5fe   :  { %808 = vrot.lane.b32.xlu1 %v742_v30, %s2889_s4  ;;  %2659 = vmatprep.mubr.msk.f32.mxu1 %vm2887_vm0, %v2886_v0 }
 0x601   :  { %812 = vrot.lane.b32.xlu0 %v739_v26, %s2890_s28 }
 0x602   :  { %832 = vrot.lane.b32.xlu1 %v800_v31, %s2890_s28 }
 0x605   :  { %834 = vrot.lane.b32.xlu0 %v797_v27, %s2891_s29 }
 0x606   :  { %814 = vrot.lane.b32.xlu1 %v742_v30, %s2890_s28 }
 0x609   :  { %818 = vrot.lane.b32.xlu0 %v739_v26, %s2891_s29 }
 0x60a   :  { %836 = vrot.lane.b32.xlu1 %v800_v31, %s2891_s29 }
 0x60e   :  { %820 = vrot.lane.b32.xlu1 %v742_v30, %s2891_s29 }
 0x667   :  { %v827_v34 = vpop.permute.xlu0 %826 }
 0x668   :  { %2653 = vmatpush3.xpose.msk.msra.mxu0 %vm839_vm4, %v827_v34 }
 0x669   :  { %2662 = vmatprep.subr.mxu0 %v2886_v0 }
 0x66b   :  { %v3060_v35 = vpop.permute.xlu0 %806  ;;  %v829_v36 = vpop.permute.xlu1 %828 }
 0x66c   :  { %2655 = vmatmul.mubr.msk.f32.vlgmr.msra.gmra.mxu0 %vm839_vm4, %v3060_v35  ;;  %2658 = vmatpush3.xpose.msk.msra.mxu1 %vm839_vm4, %v829_v36 }
 0x66d   :  { %2664 = vmatprep.mubr.msk.f32.mxu0 %vm2887_vm0, %v2886_v0  ;;  %2667 = vmatprep.subr.mxu1 %v2886_v0 }
 0x66f   :  { %v831_v37 = vpop.permute.xlu0 %830 }
 0x670   :  { %v3068_v38 = vpop.permute.xlu1 %808  ;;  %2663 = vmatpush3.xpose.msk.msra.mxu0 %vm839_vm4, %v831_v37 }
 0x671   :  { %2660 = vmatmul.mubr.msk.f32.vlgmr.msra.gmra.mxu1 %vm839_vm4, %v3068_v38  ;;  %2672 = vmatprep.subr.mxu0 %v2886_v0 }
 0x672   :  { %2669 = vmatprep.mubr.msk.f32.mxu1 %vm2887_vm0, %v2886_v0 }
 0x673   :  { %v3076_v39 = vpop.permute.xlu0 %812 }
 0x674   :  { %v833_v40 = vpop.permute.xlu1 %832  ;;  %2665 = vmatmul.mubr.msk.f32.vlgmr.msra.gmra.mxu0 %vm839_vm4, %v3076_v39 }
 0x675   :  { %2668 = vmatpush3.xpose.msk.msra.mxu1 %vm839_vm4, %v833_v40  ;;  %2674 = vmatprep.mubr.msk.f32.mxu0 %vm2887_vm0, %v2886_v0 }
 0x676   :  { %2677 = vmatprep.subr.mxu1 %v2886_v0 }
 0x677   :  { %v835_v41 = vpop.permute.xlu0 %834 }
 0x678   :  { %v3084_v42 = vpop.permute.xlu1 %814  ;;  %2673 = vmatpush3.xpose.msk.msra.mxu0 %vm839_vm4, %v835_v41 }
 0x679   :  { %2670 = vmatmul.mubr.msk.f32.vlgmr.msra.gmra.mxu1 %vm839_vm4, %v3084_v42  ;;  %2682 = vmatprep.subr.mxu0 %v2886_v0 }
 0x67a   :  { %2679 = vmatprep.mubr.msk.f32.mxu1 %vm2887_vm0, %v2886_v0 }
 0x67b   :  { %v3092_v43 = vpop.permute.xlu0 %818 }
 0x67c   :  { %v837_v44 = vpop.permute.xlu1 %836  ;;  %2675 = vmatmul.mubr.msk.f32.vlgmr.msra.gmra.mxu0 %vm839_vm4, %v3092_v43 }
 0x67d   :  { %2678 = vmatpush3.xpose.msk.msra.mxu1 %vm839_vm4, %v837_v44  ;;  %2683 = vmatpush3.msra.mxu0 %v739_v26 }
 0x67e   :  { %2687 = vmatprep.subr.mxu1 %v2886_v0  ;;  %2684 = vmatprep.mubr.msk.f32.mxu0 %vm2887_vm0, %v2886_v0 }
 0x67f   :  { %2692 = vmatprep.subr.mxu0 %v2886_v0 }
 0x680   :  { %v3101_v45 = vpop.permute.xlu1 %820 }
 0x681   :  { %2680 = vmatmul.mubr.msk.f32.vlgmr.msra.gmra.mxu1 %vm839_vm4, %v3101_v45 }
 0x682   :  { %2688 = vmatpush3.msra.mxu1 %v742_v30  ;;  %2689 = vmatprep.mubr.msk.f32.mxu1 %vm2887_vm0, %v2886_v0 }
 0x683   :  { %2697 = vmatprep.subr.mxu1 %v2886_v0 }
 0x6b8   :  { %v910_v47 = vpop.f32.mrf.mxu1 }
 0x6b9   :  { %v911_v48 = vadd.f32 %v910_v47, %v838_v46 }
 0x6ba   :  { %v2646_v49 = vpop.f32.mrf.mxu1 }
 0x6bb   :  { %v1432_v50 = vsel %vm839_vm4, %v911_v48, -inf }
 0x6bc   :  { %1433 = vmax.xlane.f32.xlu0 %v1432_v50 }
 0x6bd   :  { %v984_v51 = vpop.f32.mrf.mxu1 }
 0x6be   :  { %v985_v52 = vadd.f32 %v984_v51, %v838_v46 }
 0x6bf   :  { %v2651_v53 = vpop.f32.mrf.mxu1 }
 0x6c0   :  { %v1435_v54 = vsel %vm839_vm4, %v985_v52, -inf }
 0x6c1   :  { %1436 = vmax.xlane.f32.xlu1 %v1435_v54 }
 0x72c   :  { %v1058_v55 = vpop.f32.mrf.mxu0 }
 0x72d   :  { %v1059_v56 = vadd.f32 %v1058_v55, %v838_v46 }
 0x72e   :  { %v2656_v57 = vpop.f32.mrf.mxu0 }
 0x72f   :  { %v1438_v58 = vsel %vm839_vm4, %v1059_v56, -inf }
 0x730   :  { %1439 = vmax.xlane.f32.xlu0 %v1438_v58 }
 0x731   :  { %v1132_v59 = vpop.f32.mrf.mxu1 }
 0x732   :  { %v1133_v60 = vadd.f32 %v1132_v59, %v838_v46 }
 0x733   :  { %v2661_v61 = vpop.f32.mrf.mxu1 }
 0x734   :  { %v1441_v62 = vsel %vm839_vm4, %v1133_v60, -inf  ;;  %v1206_v63 = vpop.f32.mrf.mxu0 }
 0x735   :  { %1442 = vmax.xlane.f32.xlu0 %v1441_v62  ;;  %v1207_v1 = vadd.f32 %v1206_v63, %v838_v46 }
 0x736   :  { %v2666_v2 = vpop.f32.mrf.mxu0 }
 0x737   :  { %v1444_v5 = vsel %vm839_vm4, %v1207_v1, -inf }
 0x738   :  { %1445 = vmax.xlane.f32.xlu1 %v1444_v5 }
 0x739   :  { %v1280_v6 = vpop.f32.mrf.mxu1 }
 0x73a   :  { %v1281_v7 = vadd.f32 %v1280_v6, %v838_v46 }
 0x73b   :  { %v2671_v8 = vpop.f32.mrf.mxu1 }
 0x73c   :  { %v1447_v9 = vsel %vm839_vm4, %v1281_v7, -inf  ;;  %v1354_v10 = vpop.f32.mrf.mxu0 }
 0x73d   :  { %1448 = vmax.xlane.f32.xlu0 %v1447_v9  ;;  %v1355_v11 = vadd.f32 %v1354_v10, %v838_v46 }
 0x73e   :  { %v2676_v12 = vpop.f32.mrf.mxu0 }
 0x73f   :  { %v1450_v13 = vsel %vm839_vm4, %v1355_v11, -inf }
 0x740   :  { %1451 = vmax.xlane.f32.xlu1 %v1450_v13 }
 0x741   :  { %v1428_v14 = vpop.f32.mrf.mxu1 }
 0x742   :  { %v1429_v15 = vadd.f32 %v1428_v14, %v838_v46 }
 0x743   :  { %v2681_v16 = vpop.f32.mrf.mxu1 }
 0x744   :  { %v1453_v17 = vsel %vm839_vm4, %v1429_v15, -inf }
 0x745   :  { %1454 = vmax.xlane.f32.xlu0 %v1453_v17  ;;  %v1434_v18 = vpop.xlane.xlu0 %1433 }
 0x746   :  { %v1456_v20 = vsub.f32 %v911_v48, %v1434_v18 }
 0x748   :  { %v1464_v22 = vmul.f32 1.442695, %v1456_v20 }
 0x74a   :  { %2807 = vpow2.f32 %v1464_v22  ;;  %v1437_v23 = vpop.xlane.xlu1 %1436 }
 0x74b   :  { %v1457_v24 = vsub.f32 %v985_v52, %v1437_v23 }
 0x74d   :  { %v1466_v25 = vmul.f32 1.442695, %v1457_v24 }
 0x74f   :  { %2809 = vpow2.f32 %v1466_v25 }
 0x757   :  { %v2808_v26 = vpop.eup %2807 }
 0x758   :  { %v1480_v27 = vsel %vm839_vm4, %v2808_v26, 0.0 }
 0x759   :  { %1481 = vadd.xlane.f32.xlu1 %v1480_v27 }
 0x75c   :  { %v2810_v28 = vpop.eup %2809 }
 0x75d   :  { %v1483_v29 = vsel %vm839_vm4, %v2810_v28, 0.0 }
 0x75e   :  { %1484 = vadd.xlane.f32.xlu0 %v1483_v29 }
 0x7b9   :  { %v1440_v30 = vpop.xlane.xlu0 %1439 }
 0x7ba   :  { %v1458_v31 = vsub.f32 %v1059_v56, %v1440_v30 }
 0x7bc   :  { %v1468_v32 = vmul.f32 1.442695, %v1458_v31 }
 0x7be   :  { %2811 = vpow2.f32 %v1468_v32  ;;  %v1443_v33 = vpop.xlane.xlu0 %1442  ;;  %v2791_v32 = vld [vmem:[#allocation2 + $0x68] sm:$0xff]  }
 0x7bf   :  { %v1459_v34 = vsub.f32 %v1133_v60, %v1443_v33 }
 0x7c1   :  { %v1470_v36 = vmul.f32 1.442695, %v1459_v34  ;;  %v1446_v37 = vpop.xlane.xlu1 %1445 }
 0x7c2   :  { %v1460_v40 = vsub.f32 %v1207_v1, %v1446_v37 }
 0x7c3   :  { %2813 = vpow2.f32 %v1470_v36 }
 0x7c4   :  { %v1472_v41 = vmul.f32 1.442695, %v1460_v40  ;;  %v2792_v40 = vld [vmem:[#allocation2 + $0x60] sm:$0xff]  }
 0x7c6   :  { %2815 = vpow2.f32 %v1472_v41  ;;  %v1449_v44 = vpop.xlane.xlu0 %1448 }
 0x7c7   :  { %v1461_v46 = vsub.f32 %v1281_v7, %v1449_v44 }
 0x7c9   :  { %v1474_v47 = vmul.f32 1.442695, %v1461_v46  ;;  %v1452_v48 = vpop.xlane.xlu1 %1451 }
 0x7ca   :  { %v1462_v49 = vsub.f32 %v1355_v11, %v1452_v48 }
 0x7cb   :  { %v2812_v50 = vpop.eup %2811  ;;  %2817 = vpow2.f32 %v1474_v47 }
 0x7cc   :  { %v1476_v51 = vmul.f32 1.442695, %v1462_v49  ;;  %v1486_v52 = vsel %vm839_vm4, %v2812_v50, 0.0 }
 0x7cd   :  { %1487 = vadd.xlane.f32.xlu1 %v1486_v52 }
 0x7ce   :  { %2819 = vpow2.f32 %v1476_v51  ;;  %v1455_v53 = vpop.xlane.xlu0 %1454 }
 0x7cf   :  { %v1463_v54 = vsub.f32 %v1429_v15, %v1455_v53 }
 0x7d0   :  { %v2814_v55 = vpop.eup %2813 }
 0x7d1   :  { %v1478_v56 = vmul.f32 1.442695, %v1463_v54  ;;  %v1489_v57 = vsel %vm839_vm4, %v2814_v55, 0.0 }
 0x7d2   :  { %1490 = vadd.xlane.f32.xlu0 %v1489_v57 }
 0x7d3   :  { %v2816_v58 = vpop.eup %2815  ;;  %2821 = vpow2.f32 %v1478_v56 }
 0x7d4   :  { %v1492_v59 = vsel %vm839_vm4, %v2816_v58, 0.0 }
 0x7d5   :  { %1493 = vadd.xlane.f32.xlu1 %v1492_v59 }
 0x7d8   :  { %v2818_v60 = vpop.eup %2817 }
 0x7d9   :  { %v1495_v61 = vsel %vm839_vm4, %v2818_v60, 0.0 }
 0x7da   :  { %1496 = vadd.xlane.f32.xlu0 %v1495_v61 }
 0x7db   :  { %v2820_v62 = vpop.eup %2819 }
 0x7dc   :  { %v1498_v63 = vsel %vm839_vm4, %v2820_v62, 0.0 }
 0x7dd   :  { %1499 = vadd.xlane.f32.xlu1 %v1498_v63 }
 0x7e0   :  { %v2822_v1 = vpop.eup %2821 }
 0x7e1   :  { %v1501_v2 = vsel %vm839_vm4, %v2822_v1, 0.0 }
 0x7e2   :  { %1502 = vadd.xlane.f32.xlu0 %v1501_v2  ;;  %v1482_v5 = vpop.xlane.xlu1 %1481 }
 0x7e3   :  { %2823 = vrcp.f32 %v1482_v5 }
 0x7e7   :  { %v1485_v6 = vpop.xlane.xlu0 %1484 }
 0x7e8   :  { %2825 = vrcp.f32 %v1485_v6 }
 0x7f0   :  { %v2824_v7 = vpop.eup %2823 }
 0x7f1   :  { %v1512_v8 = vmul.f32 %v2824_v7, %v2808_v26  ;;  %v2793_v7 = vld [vmem:[%s3230_s5 + $0x8] sm:$0xff]  }
 0x7f3   :  { %2685 = vmatmul.mubr.msk.f32.vlgmr.msra.gmra.mxu0 %vm839_vm4, %v1512_v8  ;;  %v2794_v8 = vld [vmem:[%s3230_s5] sm:$0xff]  }
 0x7f4   :  { %2693 = vmatpush3.msra.mxu0 %v3060_v35  ;;  %2694 = vmatprep.mubr.msk.f32.mxu0 %vm2887_vm0, %v2886_v0 }
 0x7f5   :  { %v2826_v9 = vpop.eup %2825  ;;  %2702 = vmatprep.subr.mxu0 %v2886_v0 }
 0x7f6   :  { %v1513_v10 = vmul.f32 %v2826_v9, %v2810_v28  ;;  %v2795_v9 = vld [vmem:[%s3231_s6 + $0x18] sm:$0xff]  }
 0x7f8   :  { %2690 = vmatmul.mubr.msk.f32.vlgmr.msra.gmra.mxu1 %vm839_vm4, %v1513_v10  ;;  %v2468_v10 = vld [vmem:[%s3232_s7 + $0x5] ss:$0 sm:$0xff] }
 0x7f9   :  { %2698 = vmatpush3.msra.mxu1 %v3068_v38  ;;  %2699 = vmatprep.mubr.msk.f32.mxu1 %vm2887_vm0, %v2886_v0 }
 0x7fa   :  { %2707 = vmatprep.subr.mxu1 %v2886_v0 }
 0x856   :  { %v1488_v11 = vpop.xlane.xlu1 %1487 }
 0x857   :  { %2827 = vrcp.f32 %v1488_v11 }
 0x85b   :  { %v1491_v12 = vpop.xlane.xlu0 %1490 }
 0x85c   :  { %2829 = vrcp.f32 %v1491_v12  ;;  %v2205_v12 = vmul.f32 %v2468_v10, %v3034_v19  ;;  %v2470_v19 = vld [vmem:[%s3232_s7 + $0x1] ss:$0 sm:$0xff] }
 0x85e   :  { %v1494_v35 = vpop.xlane.xlu1 %1493 }
 0x85f   :  { %2831 = vrcp.f32 %v1494_v35 }
 0x863   :  { %v1497_v13 = vpop.xlane.xlu0 %1496 }
 0x864   :  { %v2828_v14 = vpop.eup %2827  ;;  %2833 = vrcp.f32 %v1497_v13 }
 0x865   :  { %v1514_v15 = vmul.f32 %v2828_v14, %v2812_v50 }
 0x866   :  { %v1500_v16 = vpop.xlane.xlu1 %1499 }
 0x867   :  { %2835 = vrcp.f32 %v1500_v16  ;;  %2695 = vmatmul.mubr.msk.f32.vlgmr.msra.gmra.mxu0 %vm839_vm4, %v1514_v15  ;;  %v2469_v15 = vld [vmem:[%s3232_s7] ss:$0 sm:$0xff] }
 0x868   :  { %2703 = vmatpush3.msra.mxu0 %v3076_v39  ;;  %2704 = vmatprep.mubr.msk.f32.mxu0 %vm2887_vm0, %v2886_v0 }
 0x869   :  { %v2830_v38 = vpop.eup %2829  ;;  %2712 = vmatprep.subr.mxu0 %v2886_v0 }
 0x86a   :  { %v1515_v17 = vmul.f32 %v2830_v38, %v2814_v55  ;;  %v2206_v38 = vmul.f32 %v2468_v10, %v3036_v21  ;;  %v2798_v21 = vld [vmem:[%s3231_s6] sm:$0xff]  }
 0x86b   :  { %v1503_v18 = vpop.xlane.xlu0 %1502 }
 0x86c   :  { %v2832_v20 = vpop.eup %2831  ;;  %2837 = vrcp.f32 %v1503_v18  ;;  %2700 = vmatmul.mubr.msk.f32.vlgmr.msra.gmra.mxu1 %vm839_vm4, %v1515_v17 }
 0x86d   :  { %2708 = vmatpush3.msra.mxu1 %v3084_v42  ;;  %v1516_v22 = vmul.f32 %v2832_v20, %v2816_v58  ;;  %2709 = vmatprep.mubr.msk.f32.mxu1 %vm2887_vm0, %v2886_v0 }
 0x86e   :  { %2717 = vmatprep.subr.mxu1 %v2886_v0 }
 0x86f   :  { %2705 = vmatmul.mubr.msk.f32.vlgmr.msra.gmra.mxu0 %vm839_vm4, %v1516_v22 }
 0x870   :  { %2713 = vmatpush3.msra.mxu0 %v3092_v43  ;;  %2714 = vmatprep.mubr.msk.f32.mxu0 %vm2887_vm0, %v2886_v0 }
 0x871   :  { %v2834_v39 = vpop.eup %2833  ;;  %2722 = vmatprep.subr.bf16.mxu0 %v2886_v0 }
 0x872   :  { %v1517_v23 = vmul.f32 %v2834_v39, %v2818_v60 }
 0x874   :  { %v2836_v24 = vpop.eup %2835  ;;  %2710 = vmatmul.mubr.msk.f32.vlgmr.msra.gmra.mxu1 %vm839_vm4, %v1517_v23 }
 0x875   :  { %2718 = vmatpush3.msra.mxu1 %v3101_v45  ;;  %v1518_v42 = vmul.f32 %v2836_v24, %v2820_v62  ;;  %2719 = vmatprep.mubr.msk.f32.mxu1 %vm2887_vm0, %v2886_v0 }
 0x876   :  { %2730 = vmatprep.subr.bf16.mxu1 %v2886_v0 }
 0x877   :  { %2715 = vmatmul.mubr.msk.f32.vlgmr.msra.gmra.mxu0 %vm839_vm4, %v1518_v42  ;;  %v2796_v42 = vld [vmem:[%s3231_s6 + $0x10] sm:$0xff]  }
 0x878   :  { %2726 = vmatprep.mubr.msk.bf16.mxu0 %vm2887_vm0, %v2886_v0  ;;  %2723 = vmatpush3.bf16.msra.mxu0 %v2791_v32 }
 0x879   :  { %v2838_v43 = vpop.eup %2837  ;;  %2724 = vmatprep.subr.bf16.mxu0 %v2886_v0 }
 0x87a   :  { %v1519_v25 = vmul.f32 %v2838_v43, %v2822_v1  ;;  %v2471_v43 = vld [vmem:[%s3233_s8] ss:$0 sm:$0xff] }
 0x87c   :  { %2720 = vmatmul.mubr.msk.f32.vlgmr.msra.gmra.mxu1 %vm839_vm4, %v1519_v25  ;;  %2725 = vmatpush3.bf16.msra.mxu0 %v2792_v40  ;;  %v2481_v40 = vld [vmem:[%s3232_s7 + $0x3] ss:$0 sm:$0xff] }
 0x87d   :  { %2734 = vmatprep.mubr.msk.bf16.mxu1 %vm2887_vm0, %v2886_v0  ;;  %2738 = vmatprep.subr.bf16.mxu0 %v2886_v0 }
 0x87e   :  { %2731 = vmatpush3.bf16.msra.mxu1 %v2793_v7 }
 0x87f   :  { %2732 = vmatprep.subr.bf16.mxu1 %v2886_v0 }
 0x882   :  { %2733 = vmatpush3.bf16.msra.mxu1 %v2794_v8 }
 0x8b3   :  { %v1589_v26 = vpop.f32.mrf.mxu0 }
 0x8b5   :  { %v2686_v45 = vpop.f32.mrf.mxu0 }
 0x8b8   :  { %v1662_v27 = vpop.f32.mrf.mxu1 }
 0x8ba   :  { %v2691_v28 = vpop.f32.mrf.mxu1 }
 0x927   :  { %v1735_v29 = vpop.f32.mrf.mxu0 }
 0x929   :  { %v2696_v30 = vpop.f32.mrf.mxu0 }
 0x92c   :  { %v1808_v31 = vpop.f32.mrf.mxu1 }
 0x92d   :  { %v2764_v33 = vpack.i.bf16 %v1808_v31, %v1735_v29 }
 0x92e   :  { %v2701_v34 = vpop.f32.mrf.mxu1 }
 0x92f   :  { %2765 = vrot.lane.b32.xlu1 %v2764_v33, %s2892_s2  ;;  %v1881_v36 = vpop.f32.mrf.mxu0 }
 0x931   :  { %v2706_v37 = vpop.f32.mrf.mxu0 }
 0x934   :  { %v1954_v41 = vpop.f32.mrf.mxu1 }
 0x935   :  { %v2769_v44 = vpack.i.bf16 %v1954_v41, %v1881_v36 }
 0x936   :  { %v2711_v46 = vpop.f32.mrf.mxu1 }
 0x937   :  { %2770 = vrot.lane.b32.xlu0 %v2769_v44, %s2893_s11  ;;  %v2027_v47 = vpop.f32.mrf.mxu0  ;;  %s2895_s11 = smov [#allocation5]  }
 0x939   :  { %v2716_v48 = vpop.f32.mrf.mxu0 }
 0x93c   :  { %v2100_v49 = vpop.f32.mrf.mxu1 }
 0x93d   :  { %v2774_v50 = vpack.i.bf16 %v2100_v49, %v2027_v47  ;;  %v2482_v47 = vld [vmem:[%s3232_s7 + $0x4] ss:$0 sm:$0xff] }
 0x93e   :  { %v2721_v51 = vpop.f32.mrf.mxu1 }
 0x93f   :  { %2775 = vrot.lane.b32.xlu1 %v2774_v50, %s2894_s12  ;;  %s2401_s12 = sshll.u32 %s2895_s11, 4  ;;  %s2402_s12 = int_to_ptr.vmem [resolvable:$true] %s2401_s12 }
 0x940   :  { %s2859_s13 = scalar_lea.vmem %s2402_s12, 256  ;;  %p2864_p6 = scmp.lt.s32.totalorder %s2402_s12, %s2402_s12 }
 0x941   :  { %p2860_p5 = scmp.ne.s32.totalorder %s2402_s12, %s2859_s13  ;;  %p2865_p7 = scmp.lt.s32.totalorder %s2859_s13, %s2859_s13 }
 0x943   :  { %p2866_p8 = por %p2865_p7, %p2864_p6 }
 0x945   :  { %p2867_p9 = pnand %p2866_p8, %p2860_p5 }
 0x9a1   :  { %v2766_v52 = vpop.permute.xlu1 %2765 }
 0x9a2   :  { %v2768_v54 = vunpack.i.h.bf16 %v2766_v52  ;;  %v2767_v55 = vunpack.i.l.bf16 %v2766_v52 }
 0x9a4   :  { %v2129_v59 = vsel %vm839_vm4, %v1662_v27, %v2768_v54  ;;  %v2128_v60 = vsel %vm839_vm4, %v1589_v26, %v2767_v55 }
 0x9a9   :  { %v2771_v53 = vpop.permute.xlu0 %2770 }
 0x9aa   :  { %v2773_v56 = vunpack.i.h.bf16 %v2771_v53  ;;  %v2772_v57 = vunpack.i.l.bf16 %v2771_v53 }
 0x9ac   :  { %v2132_v63 = vsel %vm2130_vm5, %v2129_v59, %v2773_v56  ;;  %v2131_v1 = vsel %vm2130_vm5, %v2128_v60, %v2772_v57 }
 0x9b1   :  { %v2776_v58 = vpop.permute.xlu1 %2775 }
 0x9b2   :  { %v2778_v61 = vunpack.i.h.bf16 %v2776_v58  ;;  %v2777_v62 = vunpack.i.l.bf16 %v2776_v58 }
 0x9b4   :  { %v2135_v2 = vsel %vm2133_vm6, %v2132_v63, %v2778_v61  ;;  %v2134_v5 = vsel %vm2133_vm6, %v2131_v1, %v2777_v62 }
 0x9b5   :  { %v2136_v6 = vpack.c.bf16 %v2135_v2, %v2134_v5 }
 0x9b7   :  { %2727 = vmatmul.mubr.msk.bf16.vlgmr.msra.gmra.mxu0 %vm67_vm1, %v2136_v6 }
 0x9b8   :  { %2746 = vmatprep.mubr.msk.bf16.mxu0 %vm2887_vm0, %v2886_v0  ;;  %2739 = vmatpush3.bf16.msra.mxu0 %v2795_v9 }
 0x9b9   :  { %2740 = vmatprep.subr.bf16.mxu0 %v2886_v0 }
 0x9bc   :  { %2741 = vmatpush3.bf16.msra.mxu0 %v2796_v42 }
 0x9bd   :  { %2742 = vmatprep.subr.bf16.mxu0 %v2886_v0 }
 0xa77   :  { %v2191_v11 = vpop.f32.mrf.mxu0 }
 0xa78   :  { %v2198_v35 = vadd.f32 %v2191_v11, %v2960_v3 }
 0xa79   :  { %v2728_v13 = vpop.f32.mrf.mxu0 }
 0xa7a   :  { %v2207_v14 = vadd.f32 %v2205_v12, %v2198_v35 }
 0xa7b   :  { %v2194_v16 = vpop.f32.mrf.mxu0 }
 0xa7c   :  { %v2199_v17 = vadd.f32 %v2194_v16, %v2965_v4  ;;  %v2214_v20 = vmul.f32 %v2469_v15, %v2207_v14  ;;  %v2797_v4 = vld [vmem:[%s3231_s6 + $0x8] sm:$0xff]  }
 0xa7d   :  { %v2729_v18 = vpop.f32.mrf.mxu0  ;;  %2743 = vmatpush3.bf16.msra.mxu0 %v2797_v4 }
 0xa7e   :  { %v2208_v22 = vadd.f32 %v2206_v38, %v2199_v17  ;;  %v2221_v3 = vadd.f32 %v2470_v19, %v2214_v20  ;;  %2744 = vmatprep.subr.bf16.mxu0 %v2886_v0  ;;  %v2475_v0 = vld [vmem:[%s3232_s7 + $0x2] ss:$0 sm:$0xff] }
 0xa80   :  { %v2215_v39 = vmul.f32 %v2469_v15, %v2208_v22 }
 0xa81   :  { %2745 = vmatpush3.bf16.msra.mxu0 %v2798_v21 }
 0xa82   :  { %v2222_v23 = vadd.f32 %v2470_v19, %v2215_v39 }
 0xa84   :  { %v2223_v24 = vpack.c.bf16 %v2222_v23, %v2221_v3 }
 0xa86   :  { %2735 = vmatmul.mubr.msk.bf16.vlgmr.msra.gmra.mxu1 %vm67_vm1, %v2223_v24 }
 0xb46   :  { %v2284_v25 = vpop.f32.mrf.mxu1 }
 0xb47   :  { %v2285_v45 = vadd.f32 %v2471_v43, %v2284_v25 }
 0xb48   :  { %v2736_v26 = vpop.f32.mrf.mxu1 }
 0xb49   :  { %v2291_v30 = vmax.f32 %v2285_v45, 0.0 }
 0xb4a   :  { %v2287_v27 = vpop.f32.mrf.mxu1 }
 0xb4b   :  { %v2288_v28 = vadd.f32 %v2471_v43, %v2287_v27 }
 0xb4c   :  { %v2737_v29 = vpop.f32.mrf.mxu1 }
 0xb4d   :  { %v2292_v31 = vmax.f32 %v2288_v28, 0.0 }
 0xb4f   :  { %v2293_v32 = vpack.c.bf16 %v2292_v31, %v2291_v30 }
 0xb51   :  { %2747 = vmatmul.mubr.msk.bf16.vlgmr.msra.gmra.mxu0 %vm2331_vm7, %v2293_v32 }
 0xc11   :  { %v2369_v33 = vpop.f32.mrf.mxu0 }
 0xc12   :  { %v2370_v34 = vadd.f32 %v2475_v0, %v2369_v33 }
 0xc13   :  { %v2748_v36 = vpop.f32.mrf.mxu0 }
 0xc14   :  { %v2376_v37 = vmax.f32 %v2370_v34, 0.0 }
 0xc15   :  { %v2372_v41 = vpop.f32.mrf.mxu0 }
 0xc16   :  { %v2378_v44 = vadd.f32 %v2376_v37, %v2221_v3  ;;  %v2373_v46 = vadd.f32 %v2475_v0, %v2372_v41 }
 0xc17   :  { %v2749_v48 = vpop.f32.mrf.mxu0 }
 0xc18   :  { %v2385_v49 = vmul.f32 %v2481_v40, %v2378_v44  ;;  %v2377_v50 = vmax.f32 %v2373_v46, 0.0 }
 0xc1a   :  { %v2392_v51 = vadd.f32 %v2482_v47, %v2385_v49  ;;  %v2379_v52 = vadd.f32 %v2377_v50, %v2222_v23 }
 0xc1c   :  { %2394 = vst.msk [vmem:[#allocation5] sm:$0xff] %vm67_vm1, %v2392_v51  ;;  %v2386_v53 = vmul.f32 %v2481_v40, %v2379_v52 }
 0xc1e   :  { %v2393_v54 = vadd.f32 %v2482_v47, %v2386_v53 }
 0xc20   :  { %2395 = vst.msk [vmem:[#allocation5 + $0x8] sm:$0xff] %vm67_vm1, %v2393_v54 }
 0xc21   :  { %2870 = shalt.err (!%p2867_p9)
}
 0xc22   :  { %s2896_s7 = smov 128  }
 0xc23   :  { %2407 = dma.vmem_to_hbm [thread:$0]  %s2402_s12, 256, %s3234_s9, [#allocation4], %s2896_s7, %s2896_s7, %s2892_s2  }
 0xc24   :  { %2881 = dma.done.wait [#allocation4], 256  }
 0xc25   :  { %2882 = vsyncadd [#allocation4], 4294967040 }
 0xc26   :  { %2411 = vsyncpa [#allocation3], 1 }
 0xc27   :  { %2412 = vsyncpa [#allocation4], 1 }

</bundles_post_ra>
